<compile_context>
chip_gen: v6e
topology: v6e:2x2x1
jax: 0.10.0
libtpu: 0.0.40
codegen_flags: <defaults>
</compile_context>

<pallas_src>
import math

import jax
import jax.numpy as jnp
from jax.experimental import pallas as pl
from jax.experimental.pallas import tpu as pltpu


def _actor_critic_kernel(state_ref, action_ref,
                         w1_ref, b1_ref, w2_ref, b2_ref, w3_ref, b3_ref,
                         inv_std_ref, out_ref):
    cdt = w1_ref.dtype                       # MXU compute dtype (bf16 by default)
    A = action_ref.shape[-1]

    x = state_ref[...]                                                # [TB, S]
    h = jnp.tanh(jnp.dot(x, w1_ref[...],
                         preferred_element_type=jnp.float32) + b1_ref[...])
    h = jnp.tanh(jnp.dot(h.astype(cdt), w2_ref[...],
                         preferred_element_type=jnp.float32) + b2_ref[...])
    act3 = jnp.dot(h.astype(cdt), w3_ref[...],
                   preferred_element_type=jnp.float32) + b3_ref[...]  # [TB, 128]

    action_mean = jnp.tanh(act3[:, :A])                               # [TB, A]
    diff = (action_ref[...] - action_mean) * inv_std_ref[...]         # [TB, A]
    quad = jnp.sum(diff * diff, axis=-1, keepdims=True)               # [TB, 1]
    value = act3[:, A:A + 1]                                          # [TB, 1]
    logprob = act3[:, A + 1:A + 2] - 0.5 * quad                       # [TB, 1]

    col = jax.lax.broadcasted_iota(jnp.int32, out_ref.shape, 1)
    out_ref[...] = jnp.where(col == 0, logprob,
                             jnp.where(col == 1, value, 0.0))


def init_params(key, state_dim, action_dim, hidden=64):
    """Deterministic PyTorch-style (uniform +-1/sqrt(fan_in)) init, [in,out] layout."""
    dims_actor = [(state_dim, hidden), (hidden, hidden), (hidden, action_dim)]
    dims_critic = [(state_dim, hidden), (hidden, hidden), (hidden, 1)]
    params = []
    for fan_in, fan_out in dims_actor + dims_critic:
        key, kw, kb = jax.random.split(key, 3)
        bound = 1.0 / math.sqrt(fan_in)
        w = jax.random.uniform(kw, (fan_in, fan_out), jnp.float32, -bound, bound)
        b = jax.random.uniform(kb, (1, fan_out), jnp.float32, -bound, bound)
        params += [w, b]
    return params  # aw1, ab1, aw2, ab2, aw3, ab3, cw1, cb1, cw2, cb2, cw3, cb3


def pack_params(params, action_var, compute_dtype=jnp.bfloat16):
    """One-time packing of actor+critic weights into fused, lane-dense matrices."""
    (aw1, ab1, aw2, ab2, aw3, ab3,
     cw1, cb1, cw2, cb2, cw3, cb3) = params
    S, H = aw1.shape
    A = aw3.shape[1]
    OUT = 128                                # padded L3 output width (lane-dense)

    w1 = jnp.concatenate([aw1, cw1], axis=1)                     # [S, 2H]
    b1 = jnp.concatenate([ab1, cb1], axis=1)                     # [1, 2H]
    zH = jnp.zeros((H, H), jnp.float32)
    w2 = jnp.concatenate([jnp.concatenate([aw2, zH], axis=1),
                          jnp.concatenate([zH, cw2], axis=1)], axis=0)  # [2H, 2H]
    b2 = jnp.concatenate([ab2, cb2], axis=1)                     # [1, 2H]

    logdet = jnp.sum(jnp.log(action_var))
    lp_const = -0.5 * A * math.log(2.0 * math.pi) - 0.5 * logdet
    ent_const = 0.5 * A * (1.0 + math.log(2.0 * math.pi)) + 0.5 * logdet

    w3 = jnp.zeros((2 * H, OUT), jnp.float32)
    w3 = w3.at[:H, :A].set(aw3).at[H:, A:A + 1].set(cw3)
    b3 = jnp.zeros((1, OUT), jnp.float32)
    b3 = b3.at[:, :A].set(ab3).at[:, A:A + 1].set(cb3).at[:, A + 1].set(lp_const)

    inv_std = (1.0 / jnp.sqrt(action_var)).reshape(1, A).astype(jnp.float32)

    return dict(w1=w1.astype(compute_dtype), b1=b1.astype(jnp.float32),
                w2=w2.astype(compute_dtype), b2=b2.astype(jnp.float32),
                w3=w3.astype(compute_dtype), b3=b3.astype(jnp.float32),
                inv_std=inv_std, ent_const=ent_const.astype(jnp.float32))


def _round_up(x, m):
    return ((x + m - 1) // m) * m


def actor_critic_evaluate(state, action, packed, *, block_b=None):
    """Fused Pallas kernel: returns (action_logprobs [B], state_val [B,1], entropy [B])."""
    B, S = state.shape
    A = action.shape[1]
    out_w = 8                                 # col0=logprob, col1=value, rest pad

    # Batch tile: multiple of 16 (bf16 sublane packing), large enough to amortize
    # per-grid-step overhead, small enough for v7x's 32 MiB scoped VMEM default.
    TB = block_b if block_b is not None else min(4096, _round_up(B, 16))
    Bp = _round_up(B, TB)

    state = state.astype(packed["w1"].dtype)
    action = action.astype(jnp.float32)
    if Bp != B:
        state = jnp.pad(state, ((0, Bp - B), (0, 0)))
        action = jnp.pad(action, ((0, Bp - B), (0, 0)))

    w_bytes = sum(int(packed[k].size) * packed[k].dtype.itemsize
                  for k in ("w1", "b1", "w2", "b2", "w3", "b3", "inv_std"))
    cost = pl.CostEstimate(
        flops=2 * Bp * (S * 128 + 128 * 128 + 128 * 128) + 8 * Bp * A,
        transcendentals=Bp * (128 + 128 + A),
        bytes_accessed=int(state.size) * state.dtype.itemsize
                       + int(action.size) * 4 + w_bytes + Bp * out_w * 4)

    def _full(arr):
        return pl.BlockSpec(arr.shape, lambda i: (0,) * arr.ndim)

    slab = pl.pallas_call(
        _actor_critic_kernel,
        out_shape=jax.ShapeDtypeStruct((Bp, out_w), jnp.float32),
        grid=(pl.cdiv(Bp, TB),),
        in_specs=[
            pl.BlockSpec((TB, S), lambda i: (i, 0)),       # state tile
            pl.BlockSpec((TB, A), lambda i: (i, 0)),       # action tile
            _full(packed["w1"]), _full(packed["b1"]),      # weights stay VMEM-resident
            _full(packed["w2"]), _full(packed["b2"]),
            _full(packed["w3"]), _full(packed["b3"]),
            _full(packed["inv_std"]),
        ],
        out_specs=pl.BlockSpec((TB, out_w), lambda i: (i, 0)),
        compiler_params=pltpu.CompilerParams(
            dimension_semantics=("parallel",)),
        cost_estimate=cost,
    )(state, action, packed["w1"], packed["b1"], packed["w2"], packed["b2"],
      packed["w3"], packed["b3"], packed["inv_std"])

    logprob = slab[:B, 0]
    value = slab[:B, 1:2]
    entropy = jnp.full((B,), packed["ent_const"], jnp.float32)  # data-independent
    return logprob, value, entropy


def _reference(state, action, params, action_var, compute_dtype=jnp.bfloat16):
    """Pure-JAX reference with the same MXU precision as the kernel (f32 accumulation)."""
    aw1, ab1, aw2, ab2, aw3, ab3, cw1, cb1, cw2, cb2, cw3, cb3 = params
    c = lambda t: t.astype(compute_dtype)
    dot = lambda a, b: jnp.dot(c(a), c(b), preferred_element_type=jnp.float32)
    h = jnp.tanh(dot(state, aw1) + ab1)
    h = jnp.tanh(dot(h, aw2) + ab2)
    mu = jnp.tanh(dot(h, aw3) + ab3)
    g = jnp.tanh(dot(state, cw1) + cb1)
    g = jnp.tanh(dot(g, cw2) + cb2)
    v = dot(g, cw3) + cb3
    A = mu.shape[-1]
    var = action_var.reshape(1, A)
    lp = (-0.5 * jnp.sum((action - mu) ** 2 / var, axis=-1)
          - 0.5 * A * jnp.log(2 * jnp.pi)
          - 0.5 * jnp.sum(jnp.log(var)))
    ent = jnp.full((state.shape[0],),
                   0.5 * A * (1 + jnp.log(2 * jnp.pi)) + 0.5 * jnp.sum(jnp.log(var)))
    return lp, v, ent


if __name__ == "__main__":
    state_dim, action_dim, batch = 16, 4, 8
    action_std_init = 0.6

    key = jax.random.PRNGKey(0)
    kp, ks, ka = jax.random.split(key, 3)
    params = init_params(kp, state_dim, action_dim)
    state = jax.random.normal(ks, (batch, state_dim), jnp.float32)
    action = jax.random.normal(ka, (batch, action_dim), jnp.float32)
    action_var = jnp.full((action_dim,), action_std_init * action_std_init, jnp.float32)

    packed = pack_params(params, action_var, compute_dtype=jnp.bfloat16)
    logprob, value, entropy = actor_critic_evaluate(state, action, packed)
    jax.block_until_ready((logprob, value, entropy))

    lp_ref, v_ref, ent_ref = _reference(state, action, params, action_var,
                                        compute_dtype=jnp.bfloat16)
    assert logprob.shape == (batch,) and value.shape == (batch, 1) and entropy.shape == (batch,)
    # bf16-at-the-MXU in both kernel and reference; residual diff is accumulation order.
    assert jnp.allclose(logprob, lp_ref, atol=2e-2, rtol=2e-2), "logprob mismatch"
    assert jnp.allclose(value, v_ref, atol=2e-2, rtol=2e-2), "value mismatch"
    assert jnp.allclose(entropy, ent_ref, atol=1e-4), "entropy mismatch"

    print("KERNEL_OK")
</pallas_src>

<mosaic_0001>
module attributes {stable_mosaic.version = 11 : i64} {
  func.func @_actor_critic_kernel(%arg0: i32, %arg1: memref<16x16xbf16, #tpu.memory_space<vmem>>, %arg2: memref<16x4xf32, #tpu.memory_space<vmem>>, %arg3: memref<16x128xbf16, #tpu.memory_space<vmem>>, %arg4: memref<1x128xf32, #tpu.memory_space<vmem>>, %arg5: memref<128x128xbf16, #tpu.memory_space<vmem>>, %arg6: memref<1x128xf32, #tpu.memory_space<vmem>>, %arg7: memref<128x128xbf16, #tpu.memory_space<vmem>>, %arg8: memref<1x128xf32, #tpu.memory_space<vmem>>, %arg9: memref<1x4xf32, #tpu.memory_space<vmem>>, %arg10: memref<16x8xf32, #tpu.memory_space<vmem>>) attributes {dimension_semantics = [#tpu.dimension_semantics<parallel>], iteration_bounds = array<i64: 1>, scalar_prefetch = 0 : i64, scratch_operands = 0 : i64, tpu.core_type = #tpu.core_type<tc>, window_params = [{transform_indices = @transform_0, window_bounds = array<i64: 16, 16>}, {transform_indices = @transform_1, window_bounds = array<i64: 16, 4>}, {pipeline_mode = #tpu.pipeline_mode<synchronous>, transform_indices = @transform_2, window_bounds = array<i64: 16, 128>}, {pipeline_mode = #tpu.pipeline_mode<synchronous>, transform_indices = @transform_3, window_bounds = array<i64: 1, 128>}, {pipeline_mode = #tpu.pipeline_mode<synchronous>, transform_indices = @transform_4, window_bounds = array<i64: 128, 128>}, {pipeline_mode = #tpu.pipeline_mode<synchronous>, transform_indices = @transform_5, window_bounds = array<i64: 1, 128>}, {pipeline_mode = #tpu.pipeline_mode<synchronous>, transform_indices = @transform_6, window_bounds = array<i64: 128, 128>}, {pipeline_mode = #tpu.pipeline_mode<synchronous>, transform_indices = @transform_7, window_bounds = array<i64: 1, 128>}, {pipeline_mode = #tpu.pipeline_mode<synchronous>, transform_indices = @transform_8, window_bounds = array<i64: 1, 4>}, {transform_indices = @transform_9, window_bounds = array<i64: 16, 8>}]} {
    %c0 = arith.constant 0 : index
    %c0_0 = arith.constant 0 : index
    %0 = vector.load %arg1[%c0, %c0_0] : memref<16x16xbf16, #tpu.memory_space<vmem>>, vector<16x16xbf16>
    %c0_1 = arith.constant 0 : index
    %c0_2 = arith.constant 0 : index
    %1 = vector.load %arg3[%c0_1, %c0_2] : memref<16x128xbf16, #tpu.memory_space<vmem>>, vector<16x128xbf16>
    %cst = arith.constant dense<0.000000e+00> : vector<16x128xf32>
    %2 = tpu.matmul %0, %1, %cst {dimension_numbers = #tpu.dot_dimension_numbers<[1], [0], [0], [1], [0, 0, 1, 1], [], []>} : vector<16x16xbf16>, vector<16x128xbf16>, vector<16x128xf32> -> vector<16x128xf32>
    %c0_3 = arith.constant 0 : index
    %c0_4 = arith.constant 0 : index
    %3 = vector.load %arg4[%c0_3, %c0_4] : memref<1x128xf32, #tpu.memory_space<vmem>>, vector<1x128xf32>
    %4 = vector.broadcast %3 : vector<1x128xf32> to vector<16x128xf32>
    %5 = arith.addf %2, %4 : vector<16x128xf32>
    %6 = math.tanh %5 : vector<16x128xf32>
    %7 = arith.truncf %6 : vector<16x128xf32> to vector<16x128xbf16>
    %c0_5 = arith.constant 0 : index
    %c0_6 = arith.constant 0 : index
    %8 = vector.load %arg5[%c0_5, %c0_6] : memref<128x128xbf16, #tpu.memory_space<vmem>>, vector<128x128xbf16>
    %cst_7 = arith.constant dense<0.000000e+00> : vector<16x128xf32>
    %9 = tpu.matmul %7, %8, %cst_7 {dimension_numbers = #tpu.dot_dimension_numbers<[1], [0], [0], [1], [0, 0, 1, 1], [], []>} : vector<16x128xbf16>, vector<128x128xbf16>, vector<16x128xf32> -> vector<16x128xf32>
    %c0_8 = arith.constant 0 : index
    %c0_9 = arith.constant 0 : index
    %10 = vector.load %arg6[%c0_8, %c0_9] : memref<1x128xf32, #tpu.memory_space<vmem>>, vector<1x128xf32>
    %11 = vector.broadcast %10 : vector<1x128xf32> to vector<16x128xf32>
    %12 = arith.addf %9, %11 : vector<16x128xf32>
    %13 = math.tanh %12 : vector<16x128xf32>
    %14 = arith.truncf %13 : vector<16x128xf32> to vector<16x128xbf16>
    %c0_10 = arith.constant 0 : index
    %c0_11 = arith.constant 0 : index
    %15 = vector.load %arg7[%c0_10, %c0_11] : memref<128x128xbf16, #tpu.memory_space<vmem>>, vector<128x128xbf16>
    %cst_12 = arith.constant dense<0.000000e+00> : vector<16x128xf32>
    %16 = tpu.matmul %14, %15, %cst_12 {dimension_numbers = #tpu.dot_dimension_numbers<[1], [0], [0], [1], [0, 0, 1, 1], [], []>} : vector<16x128xbf16>, vector<128x128xbf16>, vector<16x128xf32> -> vector<16x128xf32>
    %c0_13 = arith.constant 0 : index
    %c0_14 = arith.constant 0 : index
    %17 = vector.load %arg8[%c0_13, %c0_14] : memref<1x128xf32, #tpu.memory_space<vmem>>, vector<1x128xf32>
    %18 = vector.broadcast %17 : vector<1x128xf32> to vector<16x128xf32>
    %19 = arith.addf %16, %18 : vector<16x128xf32>
    %20 = vector.extract_strided_slice %19 {offsets = [0, 0], sizes = [16, 4], strides = [1, 1]} : vector<16x128xf32> to vector<16x4xf32>
    %21 = math.tanh %20 : vector<16x4xf32>
    %c0_15 = arith.constant 0 : index
    %c0_16 = arith.constant 0 : index
    %22 = vector.load %arg2[%c0_15, %c0_16] : memref<16x4xf32, #tpu.memory_space<vmem>>, vector<16x4xf32>
    %23 = arith.subf %22, %21 : vector<16x4xf32>
    %c0_17 = arith.constant 0 : index
    %c0_18 = arith.constant 0 : index
    %24 = vector.load %arg9[%c0_17, %c0_18] : memref<1x4xf32, #tpu.memory_space<vmem>>, vector<1x4xf32>
    %25 = vector.broadcast %24 : vector<1x4xf32> to vector<16x4xf32>
    %26 = arith.mulf %23, %25 : vector<16x4xf32>
    %27 = arith.mulf %26, %26 : vector<16x4xf32>
    %cst_19 = arith.constant dense<0.000000e+00> : vector<16xf32>
    %28 = vector.multi_reduction <add>, %27, %cst_19 [1] : vector<16x4xf32> to vector<16xf32>
    %29 = vector.shape_cast %28 : vector<16xf32> to vector<16x1xf32>
    %30 = vector.extract_strided_slice %19 {offsets = [0, 4], sizes = [16, 1], strides = [1, 1]} : vector<16x128xf32> to vector<16x1xf32>
    %31 = vector.extract_strided_slice %19 {offsets = [0, 5], sizes = [16, 1], strides = [1, 1]} : vector<16x128xf32> to vector<16x1xf32>
    %cst_20 = arith.constant 5.000000e-01 : f32
    %32 = vector.broadcast %cst_20 : f32 to vector<16x1xf32>
    %33 = arith.mulf %32, %29 : vector<16x1xf32>
    %34 = arith.subf %31, %33 : vector<16x1xf32>
    %35 = tpu.iota {dimensions = array<i32: 1>} : vector<16x8xi32>
    %c0_i32 = arith.constant 0 : i32
    %36 = vector.broadcast %c0_i32 : i32 to vector<16x8xi32>
    %37 = arith.cmpi eq, %35, %36 : vector<16x8xi32>
    %c1_i32 = arith.constant 1 : i32
    %38 = vector.broadcast %c1_i32 : i32 to vector<16x8xi32>
    %39 = arith.cmpi eq, %35, %38 : vector<16x8xi32>
    %cst_21 = arith.constant 0.000000e+00 : f32
    %40 = vector.shape_cast %30 : vector<16x1xf32> to vector<16x1xf32>
    %41 = vector.broadcast %40 : vector<16x1xf32> to vector<16x8xf32>
    %42 = vector.broadcast %cst_21 : f32 to vector<16x8xf32>
    %43 = arith.select %39, %41, %42 : vector<16x8xi1>, vector<16x8xf32>
    %44 = vector.shape_cast %34 : vector<16x1xf32> to vector<16x1xf32>
    %45 = vector.broadcast %44 : vector<16x1xf32> to vector<16x8xf32>
    %46 = arith.select %37, %45, %43 : vector<16x8xi1>, vector<16x8xf32>
    %c0_22 = arith.constant 0 : index
    %c0_23 = arith.constant 0 : index
    %47 = vector.load %arg10[%c0_22, %c0_23] : memref<16x8xf32, #tpu.memory_space<vmem>>, vector<16x8xf32>
    tpu.vector_store %arg10[%c0_22, %c0_23], %46 {strides = array<i32>} : memref<16x8xf32, #tpu.memory_space<vmem>>, vector<16x8xf32>,
    return
  }
  func.func @transform_0(%arg0: i32) -> (i32, i32) {
    %c0_i32 = arith.constant 0 : i32
    %c0_i32_0 = arith.constant 0 : i32
    return %arg0, %c0_i32 : i32, i32
  }
  func.func @transform_1(%arg0: i32) -> (i32, i32) {
    %c0_i32 = arith.constant 0 : i32
    %c0_i32_0 = arith.constant 0 : i32
    return %arg0, %c0_i32 : i32, i32
  }
  func.func @transform_2(%arg0: i32) -> (i32, i32) {
    %c0_i32 = arith.constant 0 : i32
    %c0_i32_0 = arith.constant 0 : i32
    %c0_i32_1 = arith.constant 0 : i32
    return %c0_i32, %c0_i32_0 : i32, i32
  }
  func.func @transform_3(%arg0: i32) -> (i32, i32) {
    %c0_i32 = arith.constant 0 : i32
    %c0_i32_0 = arith.constant 0 : i32
    %c0_i32_1 = arith.constant 0 : i32
    return %c0_i32, %c0_i32_0 : i32, i32
  }
  func.func @transform_4(%arg0: i32) -> (i32, i32) {
    %c0_i32 = arith.constant 0 : i32
    %c0_i32_0 = arith.constant 0 : i32
    %c0_i32_1 = arith.constant 0 : i32
    return %c0_i32, %c0_i32_0 : i32, i32
  }
  func.func @transform_5(%arg0: i32) -> (i32, i32) {
    %c0_i32 = arith.constant 0 : i32
    %c0_i32_0 = arith.constant 0 : i32
    %c0_i32_1 = arith.constant 0 : i32
    return %c0_i32, %c0_i32_0 : i32, i32
  }
  func.func @transform_6(%arg0: i32) -> (i32, i32) {
    %c0_i32 = arith.constant 0 : i32
    %c0_i32_0 = arith.constant 0 : i32
    %c0_i32_1 = arith.constant 0 : i32
    return %c0_i32, %c0_i32_0 : i32, i32
  }
  func.func @transform_7(%arg0: i32) -> (i32, i32) {
    %c0_i32 = arith.constant 0 : i32
    %c0_i32_0 = arith.constant 0 : i32
    %c0_i32_1 = arith.constant 0 : i32
    return %c0_i32, %c0_i32_0 : i32, i32
  }
  func.func @transform_8(%arg0: i32) -> (i32, i32) {
    %c0_i32 = arith.constant 0 : i32
    %c0_i32_0 = arith.constant 0 : i32
    %c0_i32_1 = arith.constant 0 : i32
    return %c0_i32, %c0_i32_0 : i32, i32
  }
  func.func @transform_9(%arg0: i32) -> (i32, i32) {
    %c0_i32 = arith.constant 0 : i32
    %c0_i32_0 = arith.constant 0 : i32
    return %arg0, %c0_i32 : i32, i32
  }
}

</mosaic_0001>

<bundles_post_ra>
// kernel: tpu_custom_call.1
= control target key start
LH: loop header
LB: loop body
LE: loop exit
PB: predicated region body
PF: predicated region fallthrough
CT: control target
= control target key end

     0   :  { %14 = vsyncpa [#allocation3], 0  ;;  %s711_s0 = inlined_call_operand.vmem [shape: bf16[16,16], index: 0, kind: input, shape index: {}]   ;;  %s712_s1 = inlined_call_operand.vmem [shape: f32[16,4], index: 1, kind: input, shape index: {}]   ;;  %s713_s2 = inlined_call_operand.vmem [shape: bf16[16,128], index: 2, kind: input, shape index: {}]   ;;  %s714_s3 = inlined_call_operand.vmem [shape: f32[1,128], index: 3, kind: input, shape index: {}]   ;;  %s715_s4 = inlined_call_operand.hbm [shape: bf16[128,128], index: 4, kind: input, shape index: {}]   ;;  %s716_s5 = inlined_call_operand.vmem [shape: f32[1,128], index: 5, kind: input, shape index: {}]   ;;  %s717_s6 = inlined_call_operand.hbm [shape: bf16[128,128], index: 6, kind: input, shape index: {}]   ;;  %s718_s7 = inlined_call_operand.vmem [shape: f32[1,128], index: 7, kind: input, shape index: {}]   ;;  %s719_s8 = inlined_call_operand.vmem [shape: f32[1,4], index: 8, kind: input, shape index: {}]   ;;  %s720_s9 = inlined_call_operand.vmem [shape: f32[16,8], index: 9, kind: output, shape index: {}]  }
   0x1   :  { %15 = vsyncpa [#allocation5], 0  ;;  %s597_s30 = smov [#allocation2]  }
   0x2   :  { %s29_s10 = sshll.u32 %s597_s30, 4  ;;  %s30_s10 = int_to_ptr.vmem [resolvable:$true] %s29_s10 }
   0x3   :  { %s561_s11 = scalar_lea.vmem %s30_s10, 1024  ;;  %p566_p1 = scmp.lt.s32.totalorder %s30_s10, %s30_s10 }
   0x4   :  { %p562_p0 = scmp.ne.s32.totalorder %s30_s10, %s561_s11  ;;  %p567_p2 = scmp.lt.s32.totalorder %s561_s11, %s561_s11 }
   0x6   :  { %p568_p3 = por %p567_p2, %p566_p1 }
   0x8   :  { %p569_p4 = pnand %p568_p3, %p562_p0 }
   0xa   :  { %572 = shalt.err (!%p569_p4)
}
   0xb   :  { %s598_s12 = smov 64   ;;  %s599_s13 = smov 4  }
   0xc   :  { %35 = dma.hbm_to_vmem [thread:$0]  %s715_s4, 1024, %s30_s10, [#allocation3], %s598_s12, %s598_s12, %s599_s13  }
   0xd   :  { %s600_s16 = smov [#allocation4]  }
   0xe   :  { %s43_s17 = sshll.u32 %s600_s16, 4  ;;  %s44_s17 = int_to_ptr.vmem [resolvable:$true] %s43_s17 }
   0xf   :  { %s581_s18 = scalar_lea.vmem %s44_s17, 1024  ;;  %p586_p6 = scmp.lt.s32.totalorder %s44_s17, %s44_s17 }
  0x10   :  { %p582_p5 = scmp.ne.s32.totalorder %s44_s17, %s581_s18  ;;  %p587_p7 = scmp.lt.s32.totalorder %s581_s18, %s581_s18 }
  0x12   :  { %p588_p8 = por %p587_p7, %p586_p6 }
  0x14   :  { %p589_p9 = pnand %p588_p8, %p582_p5 }
  0x16   :  { %592 = shalt.err (!%p589_p9)
}
  0x17   :  { %49 = dma.hbm_to_vmem [thread:$0]  %s717_s6, 1024, %s44_s17, [#allocation5], %s598_s12, %s598_s12, %s599_s13  }
  0x18   :  { %593 = dma.done.wait [#allocation3], 1024  }
  0x19   :  { %594 = vsyncadd [#allocation3], 4294966272 }
  0x1a   :  { %595 = dma.done.wait [#allocation5], 1024  }
  0x1b   :  { %596 = vsyncadd [#allocation5], 4294966272  ;;  %v601_v0 = vmov 0.0   ;;  %vm602_vm0 = vmmov 0   ;;  %v523_v1 = vld [vmem:[%s713_s2] sm:$0xff]   ;;  %vm83_vm1 = vcmask 130048  }
  0x1c   :  { %466 = vmatprep.subr.bf16.mxu0 %v601_v0  ;;  %468 = vmatprep.mubr.msk.bf16.mxu0 %vm602_vm0, %v601_v0  ;;  %v524_v2 = vld [vmem:[%s711_s0] sm:$0xff]   ;;  %v525_v3 = vld [vmem:[#allocation2 + $0x38] sm:$0xff]   ;;  %v526_v4 = vld [vmem:[#allocation2 + $0x30] sm:$0xff]   ;;  %v603_v39 = vmov 4   ;;  %vm375_vm2 = vcmask 31744   ;;  %v604_v60 = vmov 5  }
  0x1d   :  { %472 = vmatprep.subr.bf16.mxu1 %v601_v0  ;;  %488 = vmatprep.mubr.msk.bf16.mxu1 %vm602_vm0, %v601_v0  ;;  %v527_v5 = vld [vmem:[#allocation2 + $0x28] sm:$0xff]   ;;  %v528_v6 = vld [vmem:[#allocation2 + $0x20] sm:$0xff]   ;;  %v529_v7 = vld [vmem:[#allocation2 + $0x18] sm:$0xff]   ;;  %vm414_vm5 = vcmask 64512  }
  0x1e   :  { %467 = vmatpush3.bf16.msra.mxu0 %v523_v1  ;;  %473 = vmatpush3.bf16.msra.mxu1 %v525_v3  ;;  %v530_v8 = vld [vmem:[#allocation2 + $0x10] sm:$0xff]   ;;  %v531_v9 = vld [vmem:[#allocation2 + $0x8] sm:$0xff]   ;;  %v532_v10 = vld [vmem:[#allocation2] sm:$0xff]   ;;  %v386_v3 = vlaneseq }
  0x1f   :  { %492 = vmatprep.subr.bf16.mxu0 %v601_v0  ;;  %474 = vmatprep.subr.bf16.mxu1 %v601_v0  ;;  %v533_v11 = vld [vmem:[#allocation4 + $0x38] sm:$0xff]   ;;  %v534_v12 = vld [vmem:[#allocation4 + $0x30] sm:$0xff]   ;;  %v423_v13 = vld [vmem:[%s714_s3] ss:$0 sm:$0xff] }
  0x20   :  { %v535_v23 = vld [vmem:[#allocation4 + $0x28] sm:$0xff]   ;;  %v536_v24 = vld [vmem:[#allocation4 + $0x20] sm:$0xff]   ;;  %v537_v25 = vld [vmem:[#allocation4 + $0x18] sm:$0xff]   ;;  %520 = vset.pattern.permute.xlu1 %v603_v39  ;;  %521 = vset.pattern.permute.xlu0 %v604_v60 }
  0x21   :  { %469 = vmatmul.mubr.msk.bf16.vlgmr.msra.gmra.mxu0 %vm83_vm1, %v524_v2  ;;  %v538_v26 = vld [vmem:[#allocation4 + $0x10] sm:$0xff]   ;;  %v539_v27 = vld [vmem:[#allocation4 + $0x8] sm:$0xff]   ;;  %v540_v28 = vld [vmem:[#allocation4] sm:$0xff]  }
  0x22   :  { %508 = vmatprep.mubr.msk.bf16.mxu0 %vm602_vm0, %v601_v0  ;;  %475 = vmatpush3.bf16.msra.mxu1 %v526_v4  ;;  %v427_v29 = vld [vmem:[%s716_s5] ss:$0 sm:$0xff]  ;;  %v361_v51 = vld [vmem:[%s712_s1 + $0x8] sm:$0xff]  ;;  %v387_v4 = vand.u32 127, %v386_v3 }
  0x23   :  { %476 = vmatprep.subr.bf16.mxu1 %v601_v0  ;;  %493 = vmatpush3.bf16.msra.mxu0 %v533_v11  ;;  %v436_v40 = vld [vmem:[%s718_s7] ss:$0 sm:$0xff] }
  0x24   :  { %494 = vmatprep.subr.bf16.mxu0 %v601_v0  ;;  %v360_v47 = vld [vmem:[%s712_s1] sm:$0xff]  ;;  %vm389_vm3 = vcmp.eq.s32.totalorder %v387_v4, 1  ;;  %vm388_vm4 = vcmp.eq.s32.totalorder %v387_v4, 0 }
  0x25   :  { %v445_v49 = vld [vmem:[%s719_s8] ss:$0 sm:$0xff] }
  0x26   :  { %477 = vmatpush3.bf16.msra.mxu1 %v527_v5 }
  0x27   :  { %478 = vmatprep.subr.bf16.mxu1 %v601_v0  ;;  %495 = vmatpush3.bf16.msra.mxu0 %v534_v12 }
  0x28   :  { %496 = vmatprep.subr.bf16.mxu0 %v601_v0 }
  0x2a   :  { %479 = vmatpush3.bf16.msra.mxu1 %v528_v6 }
  0x2b   :  { %480 = vmatprep.subr.bf16.mxu1 %v601_v0  ;;  %497 = vmatpush3.bf16.msra.mxu0 %v535_v23 }
  0x2c   :  { %498 = vmatprep.subr.bf16.mxu0 %v601_v0 }
  0x2e   :  { %481 = vmatpush3.bf16.msra.mxu1 %v529_v7 }
  0x2f   :  { %482 = vmatprep.subr.bf16.mxu1 %v601_v0  ;;  %499 = vmatpush3.bf16.msra.mxu0 %v536_v24 }
  0x30   :  { %500 = vmatprep.subr.bf16.mxu0 %v601_v0 }
  0x32   :  { %483 = vmatpush3.bf16.msra.mxu1 %v530_v8 }
  0x33   :  { %484 = vmatprep.subr.bf16.mxu1 %v601_v0  ;;  %501 = vmatpush3.bf16.msra.mxu0 %v537_v25 }
  0x34   :  { %502 = vmatprep.subr.bf16.mxu0 %v601_v0 }
  0x36   :  { %485 = vmatpush3.bf16.msra.mxu1 %v531_v9 }
  0x37   :  { %486 = vmatprep.subr.bf16.mxu1 %v601_v0  ;;  %503 = vmatpush3.bf16.msra.mxu0 %v538_v26 }
  0x38   :  { %504 = vmatprep.subr.bf16.mxu0 %v601_v0 }
  0x3a   :  { %487 = vmatpush3.bf16.msra.mxu1 %v532_v10 }
  0x3b   :  { %505 = vmatpush3.bf16.msra.mxu0 %v539_v27 }
  0x3c   :  { %506 = vmatprep.subr.bf16.mxu0 %v601_v0 }
  0x3f   :  { %507 = vmatpush3.bf16.msra.mxu0 %v540_v28 }
  0xe1   :  { %v121_v14 = vpop.f32.mrf.mxu0 }
  0xe2   :  { %v122_v15 = vadd.f32 %v423_v13, %v121_v14 }
  0xe3   :  { %v470_v16 = vpop.f32.mrf.mxu0 }
  0xe4   :  { %541 = vtanh.f32 %v122_v15 }
  0xe5   :  { %v124_v17 = vpop.f32.mrf.mxu0 }
  0xe6   :  { %v125_v18 = vadd.f32 %v423_v13, %v124_v17 }
  0xe7   :  { %v471_v19 = vpop.f32.mrf.mxu0 }
  0xe8   :  { %543 = vtanh.f32 %v125_v18 }
  0xf1   :  { %v542_v20 = vpop.eup %541 }
  0xf5   :  { %v544_v21 = vpop.eup %543 }
  0xf6   :  { %v130_v22 = vpack.c.bf16 %v544_v21, %v542_v20 }
  0xf8   :  { %489 = vmatmul.mubr.bf16.vlgmr.msra.gmra.mxu1 %v130_v22 }
 0x1b8   :  { %v236_v30 = vpop.f32.mrf.mxu1 }
 0x1b9   :  { %v237_v31 = vadd.f32 %v427_v29, %v236_v30 }
 0x1ba   :  { %v490_v32 = vpop.f32.mrf.mxu1 }
 0x1bb   :  { %545 = vtanh.f32 %v237_v31 }
 0x1bc   :  { %v239_v33 = vpop.f32.mrf.mxu1 }
 0x1bd   :  { %v240_v34 = vadd.f32 %v427_v29, %v239_v33 }
 0x1be   :  { %v491_v35 = vpop.f32.mrf.mxu1 }
 0x1bf   :  { %547 = vtanh.f32 %v240_v34 }
 0x1c8   :  { %v546_v36 = vpop.eup %545 }
 0x1cc   :  { %v548_v37 = vpop.eup %547 }
 0x1cd   :  { %v245_v38 = vpack.c.bf16 %v548_v37, %v546_v36 }
 0x1cf   :  { %509 = vmatmul.mubr.bf16.vlgmr.msra.gmra.mxu0 %v245_v38 }
 0x28f   :  { %v351_v41 = vpop.f32.mrf.mxu0 }
 0x290   :  { %v352_v42 = vadd.f32 %v436_v40, %v351_v41 }
 0x291   :  { %v510_v43 = vpop.f32.mrf.mxu0 }
 0x292   :  { %549 = vtanh.f32 %v352_v42  ;;  %392 = vperm.xlu1 %520, %v352_v42  }
 0x293   :  { %v354_v44 = vpop.f32.mrf.mxu0 }
 0x294   :  { %v355_v45 = vadd.f32 %v436_v40, %v354_v44 }
 0x295   :  { %v511_v46 = vpop.f32.mrf.mxu0 }
 0x296   :  { %551 = vtanh.f32 %v355_v45  ;;  %397 = vperm.xlu1 %520, %v355_v45  }
 0x29a   :  { %522 = vset.pattern.permute.xlu1 %v604_v60 }
 0x29f   :  { %v550_v48 = vpop.eup %549 }
 0x2a0   :  { %v362_v50 = vsub.f32 %v360_v47, %v550_v48 }
 0x2a2   :  { %v371_v52 = vmul.f32 %v445_v49, %v362_v50 }
 0x2a3   :  { %v552_v53 = vpop.eup %551 }
 0x2a4   :  { %v373_v54 = vmul.f32 %v371_v52, %v371_v52  ;;  %v363_v55 = vsub.f32 %v361_v51, %v552_v53 }
 0x2a6   :  { %v376_v56 = vsel %vm375_vm2, %v373_v54, 0.0  ;;  %v372_v57 = vmul.f32 %v445_v49, %v363_v55 }
 0x2a7   :  { %377 = vadd.xlane.f32.xlu0 %v376_v56 }
 0x2a8   :  { %v374_v58 = vmul.f32 %v372_v57, %v372_v57 }
 0x2aa   :  { %v379_v59 = vsel %vm375_vm2, %v374_v58, 0.0 }
 0x2ab   :  { %380 = vadd.xlane.f32.xlu0 %v379_v59 }
 0x30d   :  { %v393_v5 = vpop.permute.xlu1 %392 }
 0x30e   :  { %v400_v6 = vsel %vm389_vm3, %v393_v5, 0.0 }
 0x311   :  { %v398_v7 = vpop.permute.xlu1 %397 }
 0x312   :  { %v401_v10 = vsel %vm389_vm3, %v398_v7, 0.0 }
 0x330   :  { %v378_v61 = vpop.xlane.xlu0 %377 }
 0x331   :  { %v382_v62 = vmul.f32 0.5, %v378_v61 }
 0x333   :  { %v384_v63 = vsub.f32 %v352_v42, %v382_v62 }
 0x334   :  { %v381_v0 = vpop.xlane.xlu0 %380 }
 0x335   :  { %v383_v1 = vmul.f32 0.5, %v381_v0  ;;  %404 = vperm.xlu0 %521, %v384_v63  }
 0x337   :  { %v385_v2 = vsub.f32 %v355_v45, %v383_v1 }
 0x339   :  { %409 = vperm.xlu1 %522, %v385_v2  }
 0x3b0   :  { %v405_v8 = vpop.permute.xlu0 %404 }
 0x3b1   :  { %v412_v9 = vsel %vm388_vm4, %v405_v8, %v400_v6 }
 0x3b2   :  { %415 = vst.msk [vmem:[%s720_s9] sm:$0xff] %vm414_vm5, %v412_v9 }
 0x3b4   :  { %v410_v11 = vpop.permute.xlu1 %409 }
 0x3b5   :  { %v413_v12 = vsel %vm388_vm4, %v410_v11, %v401_v10 }
 0x3b6   :  { %416 = vst.msk [vmem:[%s720_s9 + $0x8] sm:$0xff] %vm414_vm5, %v413_v12 }
 0x3b7   :  { %421 = vsyncpa [#allocation3], 1 }
 0x3b8   :  { %422 = vsyncpa [#allocation5], 1 }

</bundles_post_ra>
